<compile_context>
chip_gen: v7x
topology: tpu7x:2x2x1
jax: 0.10.0
libtpu: 0.0.40
codegen_flags: <defaults>
</compile_context>

<pallas_src>
import functools

import jax
import jax.numpy as jnp
import numpy as np
from jax.experimental import pallas as pl
from jax.experimental.pallas import tpu as pltpu


# ----------------------------------------------------------------------------
# Chip-gated tiling parameters.
# ----------------------------------------------------------------------------
def _device_kind():
    try:
        return jax.devices()[0].device_kind.lower()
    except Exception:  # pragma: no cover - CPU/interpret fallback
        return ""


def _target_block_bytes():
    kind = _device_kind()
    if "v7" in kind:
        return 8 * 1024 * 1024   # 3.2 TB/s per TC: amortize ~0.35us/step overhead
    if "v6" in kind:
        return 4 * 1024 * 1024
    return 2 * 1024 * 1024       # v5e and default: traffic-bound, modest blocks


def _vmem_limit_bytes():
    # live VMEM ~= 2 * (in_block + out_block) ~= 2.5 * block target -> plenty of headroom.
    return 48 * 1024 * 1024 if "v7" in _device_kind() else 64 * 1024 * 1024


def _config_chain():
    """(mode, core_parallel) configs tried in order of decreasing performance."""
    if "v7" in _device_kind():
        return (("stride", True), ("take", True),
                ("stride", False), ("take", False),
                ("unfused", True), ("unfused", False))
    return (("stride", False), ("take", False), ("unfused", False))


# ----------------------------------------------------------------------------
# Tiling helpers.
# ----------------------------------------------------------------------------
def _pick_pack(m, we, target_lanes=512):
    """Number of 2-row bands packed per kernel row (free reshape => must divide m)."""
    band = 2 * we
    if band >= target_lanes or m <= 1:
        return 1
    desired = min(-(-target_lanes // band), m)
    for k in range(desired, min(m, desired * 8) + 1):
        if m % k == 0:
            return k
    return 1


def _pick_block_rows(mp, row_bytes, sub, target_bytes):
    """Rows per grid step: full array if it fits the target, else a multiple of
    the dtype's sublane packing (8 f32 / 16 bf16 / 32 int8)."""
    if mp * row_bytes <= target_bytes:
        return mp
    tm = (target_bytes // row_bytes) // sub * sub
    if tm < sub:
        tm = sub
    if tm >= mp:
        return mp
    return tm


# ----------------------------------------------------------------------------
# Kernels.
# ----------------------------------------------------------------------------
def _pool_kernel(x_ref, o_ref, *, k, we, wo, mode):
    """One block of packed band rows.

    x_ref: (TM, k*2*we) -- k bands per row, each band = [input row 2i | row 2i+1].
    o_ref: fused modes : (TM, k*wo)   final pooled values (band-major).
           unfused     : (TM, we-1)   (k==1) pooled values on even lanes only.
    """
    if mode == "unfused":
        # Previously validated kernel (k == 1): compaction stays in XLA.
        x = x_ref[...]
        v = jnp.maximum(x[:, :we], x[:, we:])                  # row-pair max
        o_ref[...] = jnp.maximum(v[:, : we - 1], v[:, 1:])     # neighbour-col max
        return

    kw = k * we  # number of even (== number of odd) lanes in the packed row
    if mode == "stride":
        # Lane-strided ref reads: documented replacement for strided loads.
        even = x_ref[:, pl.ds(0, kw, stride=2)]                # (TM, kw)
        odd = x_ref[:, pl.ds(1, kw, stride=2)]                 # (TM, kw)
    else:  # mode == "take"
        x = x_ref[...]
        idx = jnp.asarray(np.arange(0, 2 * kw, 2, dtype=np.int32))
        even = jnp.take(x, idx, axis=1)
        odd = jnp.take(x, idx + 1, axis=1)

    # Horizontal (column-pair) max; chunk s of width wo = pooled cols of the
    # s-th input row inside this packed row (`we` even => parity is global).
    h = jnp.maximum(even, odd)                                  # (TM, 2*k*wo)

    # Vertical (row-pair) max, per band, with contiguous unit-stride slices.
    parts = [
        jnp.maximum(h[:, (2 * g) * wo:(2 * g + 1) * wo],
                    h[:, (2 * g + 1) * wo:(2 * g + 2) * wo])
        for g in range(k)
    ]
    o_ref[...] = parts[0] if k == 1 else jnp.concatenate(parts, axis=1)


@functools.partial(jax.jit, static_argnames=("mode", "core_parallel"))
def _pool_forward(x, mode, core_parallel):
    """nn.MaxPool2d(kernel_size=2, stride=2) (floor mode), NCHW input."""
    B, C, H, W = x.shape
    ho, wo = H // 2, W // 2
    he, we = 2 * ho, 2 * wo
    # TODO(synk): odd H/W crop materializes a copy; fold into index_map instead.
    xc = x if (he == H and we == W) else x[:, :, :he, :we]

    m = B * C * ho
    k = 1 if mode == "unfused" else _pick_pack(m, we)
    mp = m // k
    xr = xc.reshape(mp, k * 2 * we)          # free contiguous reshape

    itemsize = jnp.dtype(x.dtype).itemsize
    sub = max(8, 32 // max(1, itemsize))     # sublane packing: f32:8 bf16:16 int8:32
    row_bytes = k * 2 * we * itemsize
    tm = _pick_block_rows(mp, row_bytes, sub, _target_block_bytes())

    out_w = (we - 1) if mode == "unfused" else k * wo
    sem = pltpu.CORE_PARALLEL if core_parallel else "parallel"

    y = pl.pallas_call(
        functools.partial(_pool_kernel, k=k, we=we, wo=wo, mode=mode),
        out_shape=jax.ShapeDtypeStruct((mp, out_w), x.dtype),
        grid=(pl.cdiv(mp, tm),),
        in_specs=[pl.BlockSpec((tm, k * 2 * we), lambda i: (i, 0))],
        out_specs=pl.BlockSpec((tm, out_w), lambda i: (i, 0)),
        compiler_params=pltpu.CompilerParams(
            dimension_semantics=(sem,),
            vmem_limit_bytes=_vmem_limit_bytes(),
        ),
        cost_estimate=pl.CostEstimate(
            flops=3 * m * wo,
            transcendentals=0,
            bytes_accessed=xr.size * itemsize + mp * out_w * itemsize,
        ),
    )(xr)

    if mode == "unfused":
        # TODO(synk): only reached if neither fused compaction variant lowers on
        # this jaxlib; stride-2 lane compaction then stays in XLA.
        y = y[:, ::2]
    return y.reshape(B, C, ho, wo)


@jax.jit
def _pool_ref(x):
    """Plain-JAX reference (floor-mode 2x2/stride-2), used to validate configs."""
    B, C, H, W = x.shape
    ho, wo = H // 2, W // 2
    return jnp.max(x[:, :, :2 * ho, :2 * wo].reshape(B, C, ho, 2, wo, 2), axis=(3, 5))


@jax.jit
def _max_pool_2x2_pad1_jax(x):
    """nn.MaxPool2d(kernel_size=2, stride=2, padding=1): only hit when H==1 or
    W==1.  Tiny tensor + lane-width-1 output => plain JAX/XLA (per perf review).
    Padding value is chosen so padding can never win the max."""
    B, C, H, W = x.shape
    oh, ow = H // 2 + 1, W // 2 + 1
    if x.dtype == jnp.bool_:
        pad_val = False
    elif jnp.issubdtype(x.dtype, jnp.floating):
        pad_val = -jnp.inf
    else:
        pad_val = jnp.iinfo(x.dtype).min
    xp = jnp.pad(
        x,
        ((0, 0), (0, 0), (1, 2 * oh - H - 1), (1, 2 * ow - W - 1)),
        constant_values=pad_val,
    )
    return jnp.max(xp.reshape(B, C, oh, 2, ow, 2), axis=(3, 5))


# ----------------------------------------------------------------------------
# Public forward with graceful implementation selection.
# ----------------------------------------------------------------------------
_cfg_start = {}     # dtype-name -> first config index still worth trying
_validated = set()  # (dtype-name, config index) pairs checked against the reference


def max_pool_block(x):
    """Forward of MaxPoolBlock.  x: (B, C, H, W) NCHW, as in PyTorch."""
    H, W = x.shape[2], x.shape[3]
    if H == 1 or W == 1:
        return _max_pool_2x2_pad1_jax(x)

    chain = _config_chain()
    key = str(jnp.dtype(x.dtype))
    start = _cfg_start.get(key, 0)
    last_err = None
    for idx in range(start, len(chain)):
        mode, core_parallel = chain[idx]
        try:
            out = _pool_forward(x, mode, core_parallel)
            if (key, idx) not in _validated:
                # One-time semantic check before adopting this implementation.
                ref = _pool_ref(x)
                if not bool(jnp.allclose(out, ref, equal_nan=True)):
                    raise RuntimeError(f"config {chain[idx]} produced wrong results")
                _validated.add((key, idx))
            _cfg_start[key] = idx
            return out
        except Exception as e:       # lowering/compile failure -> try next config
            last_err = e
            _cfg_start[key] = idx + 1
    if last_err is None:
        last_err = RuntimeError("no max-pool implementation available")
    raise last_err


if __name__ == "__main__":
    key = jax.random.PRNGKey(0)
    k1, k2, k3, k4 = jax.random.split(key, 4)

    # 1) Regular branch: MaxPool2d(kernel_size=2, stride=2), small CNN shape.
    x = jax.random.normal(k1, (2, 4, 16, 16), dtype=jnp.float32)
    out = jax.block_until_ready(max_pool_block(x))
    assert out.shape == (2, 4, 8, 8), out.shape
    ref = jnp.max(x.reshape(2, 4, 8, 2, 8, 2), axis=(3, 5))
    assert jnp.allclose(out, ref), "mismatch vs reference (regular branch)"

    # 2) Multi-step grid with a partial last block (exercises the tiling path).
    xb = jax.random.normal(k2, (3, 7, 180, 150), dtype=jnp.float32)
    outb = jax.block_until_ready(max_pool_block(xb))
    assert outb.shape == (3, 7, 90, 75), outb.shape
    refb = jnp.max(xb.reshape(3, 7, 90, 2, 75, 2), axis=(3, 5))
    assert jnp.allclose(outb, refb), "mismatch vs reference (multi-block)"

    # 3) Odd spatial dims: floor mode drops the trailing row / column.
    xo = jax.random.normal(k3, (2, 3, 17, 33), dtype=jnp.float32)
    outo = jax.block_until_ready(max_pool_block(xo))
    assert outo.shape == (2, 3, 8, 16), outo.shape
    refo = jnp.max(xo[:, :, :16, :32].reshape(2, 3, 8, 2, 16, 2), axis=(3, 5))
    assert jnp.allclose(outo, refo), "mismatch vs reference (odd dims)"

    # 4) bf16 path (exercises the 16-row sublane granularity; max-pool is exact).
    xh = jax.random.normal(k2, (2, 8, 32, 48), dtype=jnp.float32).astype(jnp.bfloat16)
    outh = jax.block_until_ready(max_pool_block(xh))
    assert outh.shape == (2, 8, 16, 24) and outh.dtype == jnp.bfloat16
    refh = jnp.max(xh.reshape(2, 8, 16, 2, 24, 2), axis=(3, 5))
    assert jnp.array_equal(outh, refh), "mismatch vs reference (bf16)"

    # 5) Degenerate branch: W == 1 -> MaxPool2d(kernel_size=2, stride=2, padding=1).
    x1 = jax.random.normal(k4, (2, 4, 16, 1), dtype=jnp.float32)
    out1 = jax.block_until_ready(max_pool_block(x1))
    assert out1.shape == (2, 4, 9, 1), out1.shape
    xn = np.pad(np.asarray(x1), ((0, 0), (0, 0), (1, 1), (1, 1)),
                constant_values=-np.inf)
    ref1 = np.full((2, 4, 9, 1), -np.inf, np.float32)
    for i in range(9):
        ref1[:, :, i, 0] = xn[:, :, 2 * i:2 * i + 2, 0:2].max(axis=(2, 3))
    assert np.allclose(np.asarray(out1), ref1), "mismatch vs reference (degenerate)"

    print("KERNEL_OK")
</pallas_src>

<mosaic_0001>
module attributes {stable_mosaic.version = 11 : i64} {
  func.func @_pool_kernel(%arg0: i32, %arg1: memref<4x512xf32, #tpu.memory_space<vmem>>, %arg2: memref<4x128xf32, #tpu.memory_space<vmem>>) attributes {dimension_semantics = [#tpu.dimension_semantics<parallel>], iteration_bounds = array<i64: 1>, scalar_prefetch = 0 : i64, scratch_operands = 0 : i64, tpu.core_type = #tpu.core_type<tc>, window_params = [{transform_indices = @transform_0, window_bounds = array<i64: 4, 512>}, {transform_indices = @transform_1, window_bounds = array<i64: 4, 128>}]} {
    %c0 = arith.constant 0 : index
    %c0_0 = arith.constant 0 : index
    %0 = tpu.strided_load %arg1[%c0, %c0_0] {strides = array<i32: 1, 2>} : memref<4x512xf32, #tpu.memory_space<vmem>>, vector<4x256xf32>
    %c0_1 = arith.constant 0 : index
    %c1 = arith.constant 1 : index
    %1 = tpu.strided_load %arg1[%c0_1, %c1] {strides = array<i32: 1, 2>} : memref<4x512xf32, #tpu.memory_space<vmem>>, vector<4x256xf32>
    %2 = arith.maximumf %0, %1 : vector<4x256xf32>
    %3 = vector.extract_strided_slice %2 {offsets = [0, 0], sizes = [4, 8], strides = [1, 1]} : vector<4x256xf32> to vector<4x8xf32>
    %4 = vector.extract_strided_slice %2 {offsets = [0, 8], sizes = [4, 8], strides = [1, 1]} : vector<4x256xf32> to vector<4x8xf32>
    %5 = arith.maximumf %3, %4 : vector<4x8xf32>
    %6 = vector.extract_strided_slice %2 {offsets = [0, 16], sizes = [4, 8], strides = [1, 1]} : vector<4x256xf32> to vector<4x8xf32>
    %7 = vector.extract_strided_slice %2 {offsets = [0, 24], sizes = [4, 8], strides = [1, 1]} : vector<4x256xf32> to vector<4x8xf32>
    %8 = arith.maximumf %6, %7 : vector<4x8xf32>
    %9 = vector.extract_strided_slice %2 {offsets = [0, 32], sizes = [4, 8], strides = [1, 1]} : vector<4x256xf32> to vector<4x8xf32>
    %10 = vector.extract_strided_slice %2 {offsets = [0, 40], sizes = [4, 8], strides = [1, 1]} : vector<4x256xf32> to vector<4x8xf32>
    %11 = arith.maximumf %9, %10 : vector<4x8xf32>
    %12 = vector.extract_strided_slice %2 {offsets = [0, 48], sizes = [4, 8], strides = [1, 1]} : vector<4x256xf32> to vector<4x8xf32>
    %13 = vector.extract_strided_slice %2 {offsets = [0, 56], sizes = [4, 8], strides = [1, 1]} : vector<4x256xf32> to vector<4x8xf32>
    %14 = arith.maximumf %12, %13 : vector<4x8xf32>
    %15 = vector.extract_strided_slice %2 {offsets = [0, 64], sizes = [4, 8], strides = [1, 1]} : vector<4x256xf32> to vector<4x8xf32>
    %16 = vector.extract_strided_slice %2 {offsets = [0, 72], sizes = [4, 8], strides = [1, 1]} : vector<4x256xf32> to vector<4x8xf32>
    %17 = arith.maximumf %15, %16 : vector<4x8xf32>
    %18 = vector.extract_strided_slice %2 {offsets = [0, 80], sizes = [4, 8], strides = [1, 1]} : vector<4x256xf32> to vector<4x8xf32>
    %19 = vector.extract_strided_slice %2 {offsets = [0, 88], sizes = [4, 8], strides = [1, 1]} : vector<4x256xf32> to vector<4x8xf32>
    %20 = arith.maximumf %18, %19 : vector<4x8xf32>
    %21 = vector.extract_strided_slice %2 {offsets = [0, 96], sizes = [4, 8], strides = [1, 1]} : vector<4x256xf32> to vector<4x8xf32>
    %22 = vector.extract_strided_slice %2 {offsets = [0, 104], sizes = [4, 8], strides = [1, 1]} : vector<4x256xf32> to vector<4x8xf32>
    %23 = arith.maximumf %21, %22 : vector<4x8xf32>
    %24 = vector.extract_strided_slice %2 {offsets = [0, 112], sizes = [4, 8], strides = [1, 1]} : vector<4x256xf32> to vector<4x8xf32>
    %25 = vector.extract_strided_slice %2 {offsets = [0, 120], sizes = [4, 8], strides = [1, 1]} : vector<4x256xf32> to vector<4x8xf32>
    %26 = arith.maximumf %24, %25 : vector<4x8xf32>
    %27 = vector.extract_strided_slice %2 {offsets = [0, 128], sizes = [4, 8], strides = [1, 1]} : vector<4x256xf32> to vector<4x8xf32>
    %28 = vector.extract_strided_slice %2 {offsets = [0, 136], sizes = [4, 8], strides = [1, 1]} : vector<4x256xf32> to vector<4x8xf32>
    %29 = arith.maximumf %27, %28 : vector<4x8xf32>
    %30 = vector.extract_strided_slice %2 {offsets = [0, 144], sizes = [4, 8], strides = [1, 1]} : vector<4x256xf32> to vector<4x8xf32>
    %31 = vector.extract_strided_slice %2 {offsets = [0, 152], sizes = [4, 8], strides = [1, 1]} : vector<4x256xf32> to vector<4x8xf32>
    %32 = arith.maximumf %30, %31 : vector<4x8xf32>
    %33 = vector.extract_strided_slice %2 {offsets = [0, 160], sizes = [4, 8], strides = [1, 1]} : vector<4x256xf32> to vector<4x8xf32>
    %34 = vector.extract_strided_slice %2 {offsets = [0, 168], sizes = [4, 8], strides = [1, 1]} : vector<4x256xf32> to vector<4x8xf32>
    %35 = arith.maximumf %33, %34 : vector<4x8xf32>
    %36 = vector.extract_strided_slice %2 {offsets = [0, 176], sizes = [4, 8], strides = [1, 1]} : vector<4x256xf32> to vector<4x8xf32>
    %37 = vector.extract_strided_slice %2 {offsets = [0, 184], sizes = [4, 8], strides = [1, 1]} : vector<4x256xf32> to vector<4x8xf32>
    %38 = arith.maximumf %36, %37 : vector<4x8xf32>
    %39 = vector.extract_strided_slice %2 {offsets = [0, 192], sizes = [4, 8], strides = [1, 1]} : vector<4x256xf32> to vector<4x8xf32>
    %40 = vector.extract_strided_slice %2 {offsets = [0, 200], sizes = [4, 8], strides = [1, 1]} : vector<4x256xf32> to vector<4x8xf32>
    %41 = arith.maximumf %39, %40 : vector<4x8xf32>
    %42 = vector.extract_strided_slice %2 {offsets = [0, 208], sizes = [4, 8], strides = [1, 1]} : vector<4x256xf32> to vector<4x8xf32>
    %43 = vector.extract_strided_slice %2 {offsets = [0, 216], sizes = [4, 8], strides = [1, 1]} : vector<4x256xf32> to vector<4x8xf32>
    %44 = arith.maximumf %42, %43 : vector<4x8xf32>
    %45 = vector.extract_strided_slice %2 {offsets = [0, 224], sizes = [4, 8], strides = [1, 1]} : vector<4x256xf32> to vector<4x8xf32>
    %46 = vector.extract_strided_slice %2 {offsets = [0, 232], sizes = [4, 8], strides = [1, 1]} : vector<4x256xf32> to vector<4x8xf32>
    %47 = arith.maximumf %45, %46 : vector<4x8xf32>
    %48 = vector.extract_strided_slice %2 {offsets = [0, 240], sizes = [4, 8], strides = [1, 1]} : vector<4x256xf32> to vector<4x8xf32>
    %49 = vector.extract_strided_slice %2 {offsets = [0, 248], sizes = [4, 8], strides = [1, 1]} : vector<4x256xf32> to vector<4x8xf32>
    %50 = arith.maximumf %48, %49 : vector<4x8xf32>
    %51 = tpu.concatenate %5, %8, %11, %14, %17, %20, %23, %26, %29, %32, %35, %38, %41, %44, %47, %50 in 1 : vector<4x8xf32>, vector<4x8xf32>, vector<4x8xf32>, vector<4x8xf32>, vector<4x8xf32>, vector<4x8xf32>, vector<4x8xf32>, vector<4x8xf32>, vector<4x8xf32>, vector<4x8xf32>, vector<4x8xf32>, vector<4x8xf32>, vector<4x8xf32>, vector<4x8xf32>, vector<4x8xf32>, vector<4x8xf32> -> vector<4x128xf32>
    %c0_2 = arith.constant 0 : index
    %c0_3 = arith.constant 0 : index
    %52 = vector.load %arg2[%c0_2, %c0_3] : memref<4x128xf32, #tpu.memory_space<vmem>>, vector<4x128xf32>
    tpu.vector_store %arg2[%c0_2, %c0_3], %51 {strides = array<i32>} : memref<4x128xf32, #tpu.memory_space<vmem>>, vector<4x128xf32>,
    return
  }
  func.func @transform_0(%arg0: i32) -> (i32, i32) {
    %c0_i32 = arith.constant 0 : i32
    %c0_i32_0 = arith.constant 0 : i32
    return %arg0, %c0_i32 : i32, i32
  }
  func.func @transform_1(%arg0: i32) -> (i32, i32) {
    %c0_i32 = arith.constant 0 : i32
    %c0_i32_0 = arith.constant 0 : i32
    return %arg0, %c0_i32 : i32, i32
  }
}

module attributes {stable_mosaic.version = 11 : i64} {
  func.func @_pool_kernel(%arg0: i32, %arg1: memref<64x32xf32, #tpu.memory_space<vmem>>, %arg2: memref<64x15xf32, #tpu.memory_space<vmem>>) attributes {dimension_semantics = [#tpu.dimension_semantics<parallel>], iteration_bounds = array<i64: 1>, scalar_prefetch = 0 : i64, scratch_operands = 0 : i64, tpu.core_type = #tpu.core_type<tc>, window_params = [{transform_indices = @transform_0, window_bounds = array<i64: 64, 32>}, {transform_indices = @transform_1, window_bounds = array<i64: 64, 15>}]} {
    %c0 = arith.constant 0 : index
    %c0_0 = arith.constant 0 : index
    %0 = vector.load %arg1[%c0, %c0_0] : memref<64x32xf32, #tpu.memory_space<vmem>>, vector<64x32xf32>
    %1 = vector.extract_strided_slice %0 {offsets = [0, 0], sizes = [64, 16], strides = [1, 1]} : vector<64x32xf32> to vector<64x16xf32>
    %2 = vector.extract_strided_slice %0 {offsets = [0, 16], sizes = [64, 16], strides = [1, 1]} : vector<64x32xf32> to vector<64x16xf32>
    %3 = arith.maximumf %1, %2 : vector<64x16xf32>
    %4 = vector.extract_strided_slice %3 {offsets = [0, 0], sizes = [64, 15], strides = [1, 1]} : vector<64x16xf32> to vector<64x15xf32>
    %5 = vector.extract_strided_slice %3 {offsets = [0, 1], sizes = [64, 15], strides = [1, 1]} : vector<64x16xf32> to vector<64x15xf32>
    %6 = arith.maximumf %4, %5 : vector<64x15xf32>
    %c0_1 = arith.constant 0 : index
    %c0_2 = arith.constant 0 : index
    %7 = vector.load %arg2[%c0_1, %c0_2] : memref<64x15xf32, #tpu.memory_space<vmem>>, vector<64x15xf32>
    tpu.vector_store %arg2[%c0_1, %c0_2], %6 {strides = array<i32>} : memref<64x15xf32, #tpu.memory_space<vmem>>, vector<64x15xf32>,
    return
  }
  func.func @transform_0(%arg0: i32) -> (i32, i32) {
    %c0_i32 = arith.constant 0 : i32
    %c0_i32_0 = arith.constant 0 : i32
    return %arg0, %c0_i32 : i32, i32
  }
  func.func @transform_1(%arg0: i32) -> (i32, i32) {
    %c0_i32 = arith.constant 0 : i32
    %c0_i32_0 = arith.constant 0 : i32
    return %arg0, %c0_i32 : i32, i32
  }
}

</mosaic_0001>

<bundles_post_ra>
// kernel: _pool_forward.1
= control target key start
LH: loop header
LB: loop body
LE: loop exit
PB: predicated region body
PF: predicated region fallthrough
CT: control target
= control target key end

     0   :  { %6 = vsyncpa [#allocation3], 0  ;;  %s245_s0 = inlined_call_operand.hbm [shape: f32[64,32], index: 0, kind: input, shape index: {}]   ;;  %s246_s1 = inlined_call_operand.hbm [shape: f32[64,15], index: 1, kind: output, shape index: {}]  }
   0x1   :  { %7 = vsyncpa [#allocation4], 0  ;;  %s191_s6 = smov [#allocation2]   ;;  %s143_s10 = scalar_lea.hbm %s245_s0, 1024 }
   0x2   :  { %s13_s7 = sshll.u32 %s191_s6, 4  ;;  %p144_p0 = scmp.ne.s32.totalorder %s245_s0, %s143_s10  ;;  %s14_s7 = int_to_ptr.vmem [resolvable:$true] %s13_s7 }
   0x3   :  { %p147_p1 = scmp.lt.u32.totalorder %s143_s10, %s245_s0 }
   0x5   :  { %p149_p2 = pnand %p147_p1, %p144_p0 }
   0x7   :  { %152 = shalt.err (!%p149_p2)
}
   0x8   :  { %s153_s15 = scalar_lea.vmem %s14_s7, 1024  ;;  %p158_p4 = scmp.lt.s32.totalorder %s14_s7, %s14_s7 }
   0x9   :  { %p154_p3 = scmp.ne.s32.totalorder %s14_s7, %s153_s15  ;;  %p159_p5 = scmp.lt.s32.totalorder %s153_s15, %s153_s15 }
   0xb   :  { %p160_p6 = por %p159_p5, %p158_p4 }
   0xd   :  { %p161_p7 = pnand %p160_p6, %p154_p3 }
   0xf   :  { %164 = shalt.err (!%p161_p7)
}
  0x10   :  { %s192_s16 = smov 128   ;;  %s193_s17 = smov 8  }
  0x11   :  { %19 = dma.hbm_to_vmem [thread:$0]  %s245_s0, 1024, %s14_s7, [#allocation3], %s192_s16, %s192_s16, %s193_s17  }
  0x12   :  { %187 = dma.done.wait [#allocation3], 1024  }
  0x13   :  { %188 = vsyncadd [#allocation3], 4294966272  ;;  %v23_v0 = vld [vmem:[#allocation2] sm:$0xff]  ;;  %v25_v1 = vld [vmem:[#allocation2 + $0x10] sm:$0xff]  ;;  %s194_s20 = smov 112   ;;  %s195_s0 = smov 127  }
  0x14   :  { %39 = vrot.lane.b32.xlu0 %v23_v0, %s194_s20  ;;  %43 = vrot.lane.b32.xlu1 %v25_v1, %s194_s20  ;;  %v24_v2 = vld [vmem:[#allocation2 + $0x8] sm:$0xff]  ;;  %v26_v3 = vld [vmem:[#allocation2 + $0x18] sm:$0xff]  ;;  %v27_v4 = vld [vmem:[#allocation2 + $0x20] sm:$0xff]  ;;  %vm111_vm0 = vcmask 121856   ;;  %s196_s21 = smov [#allocation5]  }
  0x15   :  { %v28_v5 = vld [vmem:[#allocation2 + $0x28] sm:$0xff]  ;;  %v29_v6 = vld [vmem:[#allocation2 + $0x30] sm:$0xff]  ;;  %v30_v7 = vld [vmem:[#allocation2 + $0x38] sm:$0xff]  ;;  %s125_s22 = sshll.u32 %s196_s21, 4  ;;  %s126_s22 = int_to_ptr.vmem [resolvable:$true] %s125_s22 }
  0x16   :  { %s165_s23 = scalar_lea.vmem %s126_s22, 1024  ;;  %p170_p9 = scmp.lt.s32.totalorder %s126_s22, %s126_s22 }
  0x17   :  { %p166_p8 = scmp.ne.s32.totalorder %s126_s22, %s165_s23  ;;  %p171_p10 = scmp.lt.s32.totalorder %s165_s23, %s165_s23 }
  0x18   :  { %41 = vrot.lane.b32.xlu0 %v24_v2, %s194_s20  ;;  %45 = vrot.lane.b32.xlu1 %v26_v3, %s194_s20 }
  0x19   :  { %p172_p11 = por %p171_p10, %p170_p9 }
  0x1b   :  { %p173_p12 = pnand %p172_p11, %p166_p8 }
  0x1c   :  { %47 = vrot.lane.b32.xlu0 %v27_v4, %s194_s20  ;;  %49 = vrot.lane.b32.xlu1 %v28_v5, %s194_s20 }
  0x20   :  { %51 = vrot.lane.b32.xlu0 %v29_v6, %s194_s20  ;;  %53 = vrot.lane.b32.xlu1 %v30_v7, %s194_s20 }
  0x86   :  { %v40_v8 = vpop.permute.xlu0 %39  ;;  %v44_v9 = vpop.permute.xlu1 %43 }
  0x87   :  { %v63_v10 = vmax.f32 %v23_v0, %v40_v8  ;;  %v65_v11 = vmax.f32 %v25_v1, %v44_v9 }
  0x89   :  { %79 = vrot.lane.b32.xlu0 %v63_v10, %s195_s0 }
  0x8a   :  { %v42_v12 = vpop.permute.xlu0 %41  ;;  %v46_v13 = vpop.permute.xlu1 %45 }
  0x8b   :  { %v64_v14 = vmax.f32 %v24_v2, %v42_v12  ;;  %v66_v15 = vmax.f32 %v26_v3, %v46_v13 }
  0x8d   :  { %83 = vrot.lane.b32.xlu0 %v65_v11, %s195_s0  ;;  %81 = vrot.lane.b32.xlu1 %v64_v14, %s195_s0 }
  0x8e   :  { %v48_v16 = vpop.permute.xlu0 %47  ;;  %v50_v17 = vpop.permute.xlu1 %49 }
  0x8f   :  { %v67_v18 = vmax.f32 %v27_v4, %v48_v16  ;;  %v68_v19 = vmax.f32 %v28_v5, %v50_v17 }
  0x91   :  { %85 = vrot.lane.b32.xlu1 %v66_v15, %s195_s0  ;;  %87 = vrot.lane.b32.xlu0 %v67_v18, %s195_s0 }
  0x92   :  { %v52_v20 = vpop.permute.xlu0 %51  ;;  %v54_v21 = vpop.permute.xlu1 %53 }
  0x93   :  { %v69_v22 = vmax.f32 %v29_v6, %v52_v20  ;;  %v70_v23 = vmax.f32 %v30_v7, %v54_v21 }
  0x95   :  { %89 = vrot.lane.b32.xlu1 %v68_v19, %s195_s0  ;;  %91 = vrot.lane.b32.xlu0 %v69_v22, %s195_s0 }
  0x99   :  { %93 = vrot.lane.b32.xlu1 %v70_v23, %s195_s0 }
  0xfb   :  { %v80_v24 = vpop.permute.xlu0 %79 }
  0xfc   :  { %v103_v25 = vmax.f32 %v63_v10, %v80_v24 }
  0xfe   :  { %112 = vst.msk [vmem:[#allocation5] sm:$0xff] %vm111_vm0, %v103_v25 }
  0xff   :  { %v82_v26 = vpop.permute.xlu1 %81  ;;  %v84_v27 = vpop.permute.xlu0 %83 }
 0x100   :  { %v104_v28 = vmax.f32 %v64_v14, %v82_v26  ;;  %v105_v29 = vmax.f32 %v65_v11, %v84_v27 }
 0x102   :  { %113 = vst.msk [vmem:[#allocation5 + $0x8] sm:$0xff] %vm111_vm0, %v104_v28  ;;  %114 = vst.msk [vmem:[#allocation5 + $0x10] sm:$0xff] %vm111_vm0, %v105_v29 }
 0x103   :  { %v86_v30 = vpop.permute.xlu1 %85  ;;  %v88_v31 = vpop.permute.xlu0 %87 }
 0x104   :  { %v106_v32 = vmax.f32 %v66_v15, %v86_v30  ;;  %v107_v33 = vmax.f32 %v67_v18, %v88_v31 }
 0x106   :  { %115 = vst.msk [vmem:[#allocation5 + $0x18] sm:$0xff] %vm111_vm0, %v106_v32  ;;  %116 = vst.msk [vmem:[#allocation5 + $0x20] sm:$0xff] %vm111_vm0, %v107_v33 }
 0x107   :  { %v90_v34 = vpop.permute.xlu1 %89  ;;  %v92_v35 = vpop.permute.xlu0 %91 }
 0x108   :  { %v108_v36 = vmax.f32 %v68_v19, %v90_v34  ;;  %v109_v37 = vmax.f32 %v69_v22, %v92_v35 }
 0x10a   :  { %117 = vst.msk [vmem:[#allocation5 + $0x28] sm:$0xff] %vm111_vm0, %v108_v36  ;;  %118 = vst.msk [vmem:[#allocation5 + $0x30] sm:$0xff] %vm111_vm0, %v109_v37 }
 0x10b   :  { %v94_v38 = vpop.permute.xlu1 %93 }
 0x10c   :  { %v110_v39 = vmax.f32 %v70_v23, %v94_v38 }
 0x10e   :  { %119 = vst.msk [vmem:[#allocation5 + $0x38] sm:$0xff] %vm111_vm0, %v110_v39 }
 0x10f   :  { %176 = shalt.err (!%p173_p12)
}
 0x110   :  { %s177_s26 = scalar_lea.hbm %s246_s1, 1024 }
 0x111   :  { %p178_p13 = scmp.ne.s32.totalorder %s246_s1, %s177_s26  ;;  %p181_p0 = scmp.lt.u32.totalorder %s177_s26, %s246_s1 }
 0x113   :  { %p183_p1 = pnand %p181_p0, %p178_p13 }
 0x115   :  { %186 = shalt.err (!%p183_p1)
}
 0x116   :  { %131 = dma.vmem_to_hbm [thread:$0]  %s126_s22, 1024, %s246_s1, [#allocation4], %s192_s16, %s192_s16, %s193_s17  }
 0x117   :  { %189 = dma.done.wait [#allocation4], 1024  }
 0x118   :  { %190 = vsyncadd [#allocation4], 4294966272 }
 0x119   :  { %135 = vsyncpa [#allocation3], 1 }
 0x11a   :  { %136 = vsyncpa [#allocation4], 1 }

</bundles_post_ra>
